<compile_context>
chip_gen: v6e
topology: v6e:2x2x1
jax: 0.10.0
libtpu: 0.0.40
codegen_flags: <defaults>
</compile_context>

<pallas_src>
import functools

import jax
import jax.numpy as jnp
from jax import lax
from jax.experimental import pallas as pl
from jax.experimental.pallas import tpu as pltpu


def _round_up(x: int, m: int) -> int:
    return (x + m - 1) // m * m


def _tpu_generation_info():
    """Return (vmem_budget_bytes, has_two_tensorcores)."""
    try:
        kind = jax.devices()[0].device_kind.lower()
    except Exception:
        kind = ""
    if "v7" in kind:
        # v7x: 64 MiB VMEM per TensorCore -> leave headroom for Mosaic scratch.
        return 48 * 2 ** 20, True
    # v5e / v6e (and v4/v5p): 128 MiB physical VMEM, single TensorCore.
    return 96 * 2 ** 20, False


def _ntxent_kernel(q_ref, k_ref, lab_i_ref, lab_j_ref, cnt_ref, o_ref,
                   m_ref, l_ref, s_ref, *,
                   batch_size, block_m, block_n):
    i = pl.program_id(0)            # row tile (parallel)
    j = pl.program_id(1)            # col tile (reduction axis, fastest-varying)
    last_j = pl.num_programs(1) - 1

    @pl.when(j == 0)
    def _init():
        m_ref[...] = jnp.full((block_m, 1), -jnp.inf, dtype=jnp.float32)
        l_ref[...] = jnp.zeros((block_m, 1), dtype=jnp.float32)
        s_ref[...] = jnp.zeros((block_m, 1), dtype=jnp.float32)

    # Q is already scaled by 1/T and both operands are already in the compute
    # dtype (done once in the wrapper).  Contract on D directly — no transpose.
    sim = lax.dot_general(q_ref[...], k_ref[...], (((1,), (1,)), ((), ())),
                          preferred_element_type=jnp.float32)   # [bm, bn] f32

    lab_eq = lab_i_ref[...] == lab_j_ref[...]                   # [bm, bn] bool

    # Boundary tiles are the only ones that need position-based masks:
    #   i == j      -> diagonal (self-similarity) exclusion
    #   j == last_j -> padded columns (col >= batch_size) exclusion
    is_boundary = jnp.logical_or(i == j, j == last_j)

    @pl.when(jnp.logical_not(is_boundary))
    def _fast_tile():
        # Common path: every column is a valid, non-diagonal column.
        m_old = m_ref[...]
        m_new = jnp.maximum(m_old, jnp.max(sim, axis=1, keepdims=True))
        alpha = jnp.exp(m_old - m_new)
        p = jnp.exp(sim - m_new)
        l_ref[...] = alpha * l_ref[...] + jnp.sum(p, axis=1, keepdims=True)
        s_ref[...] = s_ref[...] + jnp.sum(jnp.where(lab_eq, sim, 0.0),
                                          axis=1, keepdims=True)
        m_ref[...] = m_new

    @pl.when(is_boundary)
    def _boundary_tile():
        row_g = i * block_m + lax.broadcasted_iota(jnp.int32, (block_m, block_n), 0)
        col_g = j * block_n + lax.broadcasted_iota(jnp.int32, (block_m, block_n), 1)
        valid = col_g < batch_size                              # drop padded cols
        denom_mask = jnp.logical_and(valid, row_g != col_g)     # self excluded
        pos_mask = jnp.logical_and(denom_mask, lab_eq)          # positives

        # Running max tracks ALL valid columns (incl. the diagonal) to match the
        # reference's logits_max; the exp-sum excludes the diagonal, matching
        # exp_logits * logits_mask.
        m_old = m_ref[...]
        m_tile = jnp.max(jnp.where(valid, sim, -jnp.inf), axis=1, keepdims=True)
        m_new = jnp.maximum(m_old, m_tile)
        alpha = jnp.exp(m_old - m_new)
        p = jnp.where(denom_mask, jnp.exp(sim - m_new), 0.0)
        l_ref[...] = alpha * l_ref[...] + jnp.sum(p, axis=1, keepdims=True)
        s_ref[...] = s_ref[...] + jnp.sum(jnp.where(pos_mask, sim, 0.0),
                                          axis=1, keepdims=True)
        m_ref[...] = m_new

    @pl.when(j == last_j)
    def _finalize():
        c = cnt_ref[...]                       # precomputed positive count [bm,1]
        safe_c = jnp.maximum(c, 1.0)           # rows with no positives -> loss 0
        # Epsilon placement matches the reference: log(sum(exp_logits) + 1e-6).
        log_denom = jnp.log(l_ref[...] + 1e-6)
        # sum_{j in P_i} log_prob = s - c*m - c*log(denom)
        mean_log_prob_pos = (s_ref[...] - c * (m_ref[...] + log_denom)) / safe_c
        o_ref[...] = -mean_log_prob_pos


def ntxent_loss(features: jax.Array,
                labels: jax.Array,
                temperature: float = 0.07,
                reduction: str = "mean",
                *,
                block_size: int = 256,
                compute_dtype=jnp.bfloat16) -> jax.Array:
    """Pallas NT-Xent / supervised contrastive loss.

    features: [B, D] float array
    labels:   [B] int array
    reduction: 'mean' | 'sum' | 'none' ('none' returns a [B] per-sample vector)
    block_size: row/col tile.  256 is a good default on v5e/v6e/v7x; on
                v5e/v6e (128 MiB VMEM) 512 is worth sweeping for large B.
    compute_dtype: MXU input dtype.  bf16 (default) halves HBM traffic for the
                   re-streamed K operand; pass jnp.float32 for fp32 parity with
                   the PyTorch reference (logits reach ~1/T, so bf16 gives
                   percent-level per-sample error — fine for a loss).
    """
    if labels is None:
        # TODO(synk): labels=None branch of the PyTorch module raises
        # NotImplementedError; mirrored here (no kernel needed).
        raise NotImplementedError("NT-Xent without labels not implemented")
    if reduction not in ("mean", "sum", "none"):
        raise ValueError(f"unknown reduction: {reduction}")

    B, D = features.shape
    block_size = max(_round_up(int(block_size), 128), 128)
    vmem_cap, multi_tc = _tpu_generation_info()

    # Pad D to a 128-lane multiple; pad B to a tile multiple.
    Dp = max(_round_up(D, 128), 128)
    if B <= block_size:
        if multi_tc and B > 128:
            tile = 128                       # keep >= 2 row tiles so both TCs work
        else:
            tile = max(_round_up(B, 8), 8)   # single tile == full (padded) array
    else:
        tile = block_size
    Bp = _round_up(B, tile)

    inv_t = 1.0 / float(temperature)
    cd = jnp.dtype(compute_dtype)

    feats_p = features.astype(jnp.float32)
    if (Bp, Dp) != (B, D):
        feats_p = jnp.pad(feats_p, ((0, Bp - B), (0, Dp - D)))
    # Pre-scale Q by 1/T and pre-cast both operands once (N:1 hoist — the K
    # stream is re-read Bp/tile times from HBM).
    q_in = (feats_p * inv_t).astype(compute_dtype)
    k_in = feats_p.astype(compute_dtype)

    lab_real = labels.reshape(-1).astype(jnp.int32)                  # [B]
    # Positive count per row (same label, excluding self, real columns only).
    pos_cnt = (jnp.sum(lab_real[None, :] == lab_real[:, None], axis=1)
               .astype(jnp.float32) - 1.0)                           # [B]
    lab = lab_real
    if Bp != B:
        lab = jnp.pad(lab, (0, Bp - B))
        pos_cnt = jnp.pad(pos_cnt, (0, Bp - B))
    lab_col = lab.reshape(Bp, 1)     # row labels, (tile, 1) blocks
    lab_row = lab.reshape(1, Bp)     # col labels, lane-dense (1, tile) blocks
    cnt_col = pos_cnt.reshape(Bp, 1)

    n_tiles = Bp // tile
    grid = (n_tiles, n_tiles)

    kernel = functools.partial(
        _ntxent_kernel,
        batch_size=B,
        block_m=tile,
        block_n=tile,
    )

    # VMEM budget: double-buffered q/k feature tiles + f32 [tile,tile] temporaries.
    est = (2 * 2 * tile * Dp * cd.itemsize   # q/k streams, double-buffered
           + 6 * tile * tile * 4             # sim / exp / mask temporaries
           + 16 * tile * 4)                  # labels, counts, output, accumulators
    vmem_limit = int(min(max(2 * est, 32 * 2 ** 20), vmem_cap))

    cost = pl.CostEstimate(
        flops=2 * Bp * Bp * Dp,
        transcendentals=Bp * Bp,
        bytes_accessed=int((n_tiles + 1) * Bp * Dp * cd.itemsize + 4 * Bp * 4),
    )

    out = pl.pallas_call(
        kernel,
        out_shape=jax.ShapeDtypeStruct((Bp, 1), jnp.float32),
        grid_spec=pltpu.PrefetchScalarGridSpec(
            num_scalar_prefetch=0,
            grid=grid,
            in_specs=[
                pl.BlockSpec((tile, Dp), lambda i, j: (i, 0)),   # Q (pre-scaled)
                # TODO(synk): if xprof shows exposed DMA at large D, add
                # pipeline_mode=pl.Buffered(3) to this K spec only.
                pl.BlockSpec((tile, Dp), lambda i, j: (j, 0)),   # K
                pl.BlockSpec((tile, 1), lambda i, j: (i, 0)),    # row labels
                pl.BlockSpec((1, tile), lambda i, j: (0, j)),    # col labels
                pl.BlockSpec((tile, 1), lambda i, j: (i, 0)),    # positive counts
            ],
            out_specs=pl.BlockSpec((tile, 1), lambda i, j: (i, 0)),
            scratch_shapes=[
                pltpu.VMEM((tile, 1), jnp.float32),   # m: running max
                pltpu.VMEM((tile, 1), jnp.float32),   # l: running exp-sum
                pltpu.VMEM((tile, 1), jnp.float32),   # s: sum(mask * sim)
            ],
        ),
        compiler_params=pltpu.CompilerParams(
            dimension_semantics=("parallel", "arbitrary"),
            vmem_limit_bytes=vmem_limit),
        cost_estimate=cost,
    )(q_in, k_in, lab_col, lab_row, cnt_col)

    per_sample = out[:B, 0]
    if reduction == "mean":
        return jnp.mean(per_sample)
    elif reduction == "sum":
        return jnp.sum(per_sample)
    return per_sample


def _reference_ntxent(features, labels, temperature=0.07, reduction="mean"):
    """Pure-JAX f32 reference mirroring the PyTorch forward."""
    B = features.shape[0]
    sim = (features @ features.T) / temperature
    l = labels.reshape(-1, 1)
    mask = (l == l.T).astype(jnp.float32)
    logits_mask = jnp.ones_like(mask) - jnp.eye(B, dtype=jnp.float32)
    mask = mask * logits_mask
    logits_max = jnp.max(sim, axis=1, keepdims=True)
    logits = sim - logits_max
    exp_logits = jnp.exp(logits) * logits_mask
    log_prob = logits - jnp.log(jnp.sum(exp_logits, axis=1, keepdims=True) + 1e-6)
    mask_sum = jnp.sum(mask, axis=1)
    mask_sum = jnp.where(mask_sum == 0, jnp.ones_like(mask_sum), mask_sum)
    mean_log_prob_pos = jnp.sum(mask * log_prob, axis=1) / mask_sum
    loss = -mean_log_prob_pos
    if reduction == "mean":
        return jnp.mean(loss)
    elif reduction == "sum":
        return jnp.sum(loss)
    return loss


if __name__ == "__main__":
    key = jax.random.PRNGKey(0)
    kf, kl = jax.random.split(key)

    # Small shapes consistent with the module: batch=8, embedding_dim=32.
    B, D = 8, 32
    features = jax.random.normal(kf, (B, D), dtype=jnp.float32)
    features = features / jnp.linalg.norm(features, axis=1, keepdims=True)
    labels = jax.random.randint(kl, (B,), 0, 3, dtype=jnp.int32)

    ref_mean = _reference_ntxent(features, labels, 0.07, "mean")
    ref_sum = _reference_ntxent(features, labels, 0.07, "sum")
    ref_none = _reference_ntxent(features, labels, 0.07, "none")

    # Exact-semantics path (f32 MXU): tight tolerance.
    loss_f32 = jax.block_until_ready(
        ntxent_loss(features, labels, 0.07, "mean", compute_dtype=jnp.float32))
    assert jnp.allclose(loss_f32, ref_mean, rtol=1e-4, atol=1e-4), (loss_f32, ref_mean)

    # Fast path (bf16 MXU inputs, f32 accumulation): looser tolerance.
    loss_bf16 = jax.block_until_ready(ntxent_loss(features, labels, 0.07, "mean"))
    assert jnp.allclose(loss_bf16, ref_mean, rtol=5e-2, atol=5e-2), (loss_bf16, ref_mean)

    loss_sum = jax.block_until_ready(
        ntxent_loss(features, labels, 0.07, "sum", compute_dtype=jnp.float32))
    assert jnp.allclose(loss_sum, ref_sum, rtol=1e-4, atol=1e-4), (loss_sum, ref_sum)

    loss_none = jax.block_until_ready(
        ntxent_loss(features, labels, 0.07, "none", compute_dtype=jnp.float32))
    assert loss_none.shape == (B,)
    assert jnp.allclose(loss_none, ref_none, rtol=1e-4, atol=1e-4), (loss_none, ref_none)

    # Exercise the multi-tile path (online LSE, fast/boundary tile split, padding).
    B2, D2 = 320, 192
    f2 = jax.random.normal(jax.random.PRNGKey(1), (B2, D2), dtype=jnp.float32)
    f2 = f2 / jnp.linalg.norm(f2, axis=1, keepdims=True)
    l2 = jax.random.randint(jax.random.PRNGKey(2), (B2,), 0, 10, dtype=jnp.int32)
    got = jax.block_until_ready(
        ntxent_loss(f2, l2, 0.07, "mean", block_size=128, compute_dtype=jnp.float32))
    want = _reference_ntxent(f2, l2, 0.07, "mean")
    assert jnp.allclose(got, want, rtol=1e-3, atol=1e-3), (got, want)

    print("KERNEL_OK")
</pallas_src>

<mosaic_0001>
module attributes {stable_mosaic.version = 11 : i64} {
  func.func @_ntxent_kernel(%arg0: i32, %arg1: i32, %arg2: memref<8x128xf32, #tpu.memory_space<vmem>>, %arg3: memref<8x128xf32, #tpu.memory_space<vmem>>, %arg4: memref<8x1xi32, #tpu.memory_space<vmem>>, %arg5: memref<1x8xi32, #tpu.memory_space<vmem>>, %arg6: memref<8x1xf32, #tpu.memory_space<vmem>>, %arg7: memref<8x1xf32, #tpu.memory_space<vmem>>, %arg8: memref<8x1xf32, #tpu.memory_space<vmem>>, %arg9: memref<8x1xf32, #tpu.memory_space<vmem>>, %arg10: memref<8x1xf32, #tpu.memory_space<vmem>>) attributes {dimension_semantics = [#tpu.dimension_semantics<parallel>, #tpu.dimension_semantics<arbitrary>], iteration_bounds = array<i64: 1, 1>, scalar_prefetch = 0 : i64, scratch_operands = 3 : i64, tpu.core_type = #tpu.core_type<tc>, window_params = [{transform_indices = @transform_0, window_bounds = array<i64: 8, 128>}, {transform_indices = @transform_1, window_bounds = array<i64: 8, 128>}, {transform_indices = @transform_2, window_bounds = array<i64: 8, 1>}, {transform_indices = @transform_3, window_bounds = array<i64: 1, 8>}, {transform_indices = @transform_4, window_bounds = array<i64: 8, 1>}, {transform_indices = @transform_5, window_bounds = array<i64: 8, 1>}]} {
    %c0_i32 = arith.constant 0 : i32
    %0 = arith.cmpi eq, %arg1, %c0_i32 : i32
    %1 = arith.extui %0 : i1 to i32
    %c0_i32_0 = arith.constant 0 : i32
    %2 = arith.cmpi ne, %1, %c0_i32_0 : i32
    scf.if %2 {
      %cst_13 = arith.constant 0xFF800000 : f32
      %22 = vector.broadcast %cst_13 : f32 to vector<8x1xf32>
      %c0_14 = arith.constant 0 : index
      %c0_15 = arith.constant 0 : index
      %23 = vector.load %arg8[%c0_14, %c0_15] : memref<8x1xf32, #tpu.memory_space<vmem>>, vector<8x1xf32>
      tpu.vector_store %arg8[%c0_14, %c0_15], %22 {strides = array<i32>} : memref<8x1xf32, #tpu.memory_space<vmem>>, vector<8x1xf32>,
      %cst_16 = arith.constant 0.000000e+00 : f32
      %24 = vector.broadcast %cst_16 : f32 to vector<8x1xf32>
      %c0_17 = arith.constant 0 : index
      %c0_18 = arith.constant 0 : index
      %25 = vector.load %arg9[%c0_17, %c0_18] : memref<8x1xf32, #tpu.memory_space<vmem>>, vector<8x1xf32>
      tpu.vector_store %arg9[%c0_17, %c0_18], %24 {strides = array<i32>} : memref<8x1xf32, #tpu.memory_space<vmem>>, vector<8x1xf32>,
      %cst_19 = arith.constant 0.000000e+00 : f32
      %26 = vector.broadcast %cst_19 : f32 to vector<8x1xf32>
      %c0_20 = arith.constant 0 : index
      %c0_21 = arith.constant 0 : index
      %27 = vector.load %arg10[%c0_20, %c0_21] : memref<8x1xf32, #tpu.memory_space<vmem>>, vector<8x1xf32>
      tpu.vector_store %arg10[%c0_20, %c0_21], %26 {strides = array<i32>} : memref<8x1xf32, #tpu.memory_space<vmem>>, vector<8x1xf32>,
    } else {
    }
    %c0 = arith.constant 0 : index
    %c0_1 = arith.constant 0 : index
    %3 = vector.load %arg2[%c0, %c0_1] : memref<8x128xf32, #tpu.memory_space<vmem>>, vector<8x128xf32>
    %c0_2 = arith.constant 0 : index
    %c0_3 = arith.constant 0 : index
    %4 = vector.load %arg3[%c0_2, %c0_3] : memref<8x128xf32, #tpu.memory_space<vmem>>, vector<8x128xf32>
    %cst = arith.constant dense<0.000000e+00> : vector<8x8xf32>
    %5 = tpu.matmul %3, %4, %cst {dimension_numbers = #tpu.dot_dimension_numbers<[1], [1], [0], [0], [0, 0, 1, 0], [], []>} : vector<8x128xf32>, vector<8x128xf32>, vector<8x8xf32> -> vector<8x8xf32>
    %c0_4 = arith.constant 0 : index
    %c0_5 = arith.constant 0 : index
    %6 = vector.load %arg4[%c0_4, %c0_5] : memref<8x1xi32, #tpu.memory_space<vmem>>, vector<8x1xi32>
    %c0_6 = arith.constant 0 : index
    %c0_7 = arith.constant 0 : index
    %7 = vector.load %arg5[%c0_6, %c0_7] : memref<1x8xi32, #tpu.memory_space<vmem>>, vector<1x8xi32>
    %8 = vector.broadcast %6 : vector<8x1xi32> to vector<8x8xi32>
    %9 = vector.broadcast %7 : vector<1x8xi32> to vector<8x8xi32>
    %10 = arith.cmpi eq, %8, %9 : vector<8x8xi32>
    %11 = arith.cmpi eq, %arg0, %arg1 : i32
    %c0_i32_8 = arith.constant 0 : i32
    %12 = arith.cmpi eq, %arg1, %c0_i32_8 : i32
    %13 = arith.ori %11, %12 : i1
    %true = arith.constant true
    %14 = arith.xori %13, %true : i1
    %15 = arith.extui %14 : i1 to i32
    %c0_i32_9 = arith.constant 0 : i32
    %16 = arith.cmpi ne, %15, %c0_i32_9 : i32
    scf.if %16 {
      %c0_13 = arith.constant 0 : index
      %c0_14 = arith.constant 0 : index
      %22 = vector.load %arg8[%c0_13, %c0_14] : memref<8x1xf32, #tpu.memory_space<vmem>>, vector<8x1xf32>
      %cst_15 = arith.constant dense<0xFF800000> : vector<8xf32>
      %23 = vector.multi_reduction <maximumf>, %5, %cst_15 [1] : vector<8x8xf32> to vector<8xf32>
      %24 = vector.shape_cast %23 : vector<8xf32> to vector<8x1xf32>
      %25 = arith.maximumf %22, %24 : vector<8x1xf32>
      %26 = arith.subf %22, %25 : vector<8x1xf32>
      %27 = math.exp %26 : vector<8x1xf32>
      %28 = vector.broadcast %25 : vector<8x1xf32> to vector<8x8xf32>
      %29 = arith.subf %5, %28 : vector<8x8xf32>
      %30 = math.exp %29 : vector<8x8xf32>
      %c0_16 = arith.constant 0 : index
      %c0_17 = arith.constant 0 : index
      %31 = vector.load %arg9[%c0_16, %c0_17] : memref<8x1xf32, #tpu.memory_space<vmem>>, vector<8x1xf32>
      %32 = arith.mulf %27, %31 : vector<8x1xf32>
      %cst_18 = arith.constant dense<0.000000e+00> : vector<8xf32>
      %33 = vector.multi_reduction <add>, %30, %cst_18 [1] : vector<8x8xf32> to vector<8xf32>
      %34 = vector.shape_cast %33 : vector<8xf32> to vector<8x1xf32>
      %35 = arith.addf %32, %34 : vector<8x1xf32>
      %c0_19 = arith.constant 0 : index
      %c0_20 = arith.constant 0 : index
      %36 = vector.load %arg9[%c0_19, %c0_20] : memref<8x1xf32, #tpu.memory_space<vmem>>, vector<8x1xf32>
      tpu.vector_store %arg9[%c0_19, %c0_20], %35 {strides = array<i32>} : memref<8x1xf32, #tpu.memory_space<vmem>>, vector<8x1xf32>,
      %c0_21 = arith.constant 0 : index
      %c0_22 = arith.constant 0 : index
      %37 = vector.load %arg10[%c0_21, %c0_22] : memref<8x1xf32, #tpu.memory_space<vmem>>, vector<8x1xf32>
      %cst_23 = arith.constant 0.000000e+00 : f32
      %38 = vector.broadcast %cst_23 : f32 to vector<8x8xf32>
      %39 = arith.select %10, %5, %38 : vector<8x8xi1>, vector<8x8xf32>
      %cst_24 = arith.constant dense<0.000000e+00> : vector<8xf32>
      %40 = vector.multi_reduction <add>, %39, %cst_24 [1] : vector<8x8xf32> to vector<8xf32>
      %41 = vector.shape_cast %40 : vector<8xf32> to vector<8x1xf32>
      %42 = arith.addf %37, %41 : vector<8x1xf32>
      %c0_25 = arith.constant 0 : index
      %c0_26 = arith.constant 0 : index
      %43 = vector.load %arg10[%c0_25, %c0_26] : memref<8x1xf32, #tpu.memory_space<vmem>>, vector<8x1xf32>
      tpu.vector_store %arg10[%c0_25, %c0_26], %42 {strides = array<i32>} : memref<8x1xf32, #tpu.memory_space<vmem>>, vector<8x1xf32>,
      %c0_27 = arith.constant 0 : index
      %c0_28 = arith.constant 0 : index
      %44 = vector.load %arg8[%c0_27, %c0_28] : memref<8x1xf32, #tpu.memory_space<vmem>>, vector<8x1xf32>
      tpu.vector_store %arg8[%c0_27, %c0_28], %25 {strides = array<i32>} : memref<8x1xf32, #tpu.memory_space<vmem>>, vector<8x1xf32>,
    } else {
    }
    %17 = arith.extui %13 : i1 to i32
    %c0_i32_10 = arith.constant 0 : i32
    %18 = arith.cmpi ne, %17, %c0_i32_10 : i32
    scf.if %18 {
      %c8_i32 = arith.constant 8 : i32
      %22 = arith.muli %arg0, %c8_i32 : i32
      %23 = tpu.iota {dimensions = array<i32: 0>} : vector<8x8xi32>
      %24 = vector.broadcast %22 : i32 to vector<8x8xi32>
      %25 = arith.addi %24, %23 : vector<8x8xi32>
      %c8_i32_13 = arith.constant 8 : i32
      %26 = arith.muli %arg1, %c8_i32_13 : i32
      %27 = tpu.iota {dimensions = array<i32: 1>} : vector<8x8xi32>
      %28 = vector.broadcast %26 : i32 to vector<8x8xi32>
      %29 = arith.addi %28, %27 : vector<8x8xi32>
      %c8_i32_14 = arith.constant 8 : i32
      %30 = vector.broadcast %c8_i32_14 : i32 to vector<8x8xi32>
      %31 = arith.cmpi slt, %29, %30 : vector<8x8xi32>
      %32 = arith.cmpi ne, %25, %29 : vector<8x8xi32>
      %33 = arith.andi %31, %32 : vector<8x8xi1>
      %34 = arith.andi %33, %10 : vector<8x8xi1>
      %c0_15 = arith.constant 0 : index
      %c0_16 = arith.constant 0 : index
      %35 = vector.load %arg8[%c0_15, %c0_16] : memref<8x1xf32, #tpu.memory_space<vmem>>, vector<8x1xf32>
      %cst_17 = arith.constant 0xFF800000 : f32
      %36 = vector.broadcast %cst_17 : f32 to vector<8x8xf32>
      %37 = arith.select %31, %5, %36 : vector<8x8xi1>, vector<8x8xf32>
      %cst_18 = arith.constant dense<0xFF800000> : vector<8xf32>
      %38 = vector.multi_reduction <maximumf>, %37, %cst_18 [1] : vector<8x8xf32> to vector<8xf32>
      %39 = vector.shape_cast %38 : vector<8xf32> to vector<8x1xf32>
      %40 = arith.maximumf %35, %39 : vector<8x1xf32>
      %41 = arith.subf %35, %40 : vector<8x1xf32>
      %42 = math.exp %41 : vector<8x1xf32>
      %43 = vector.broadcast %40 : vector<8x1xf32> to vector<8x8xf32>
      %44 = arith.subf %5, %43 : vector<8x8xf32>
      %45 = math.exp %44 : vector<8x8xf32>
      %cst_19 = arith.constant 0.000000e+00 : f32
      %46 = vector.broadcast %cst_19 : f32 to vector<8x8xf32>
      %47 = arith.select %33, %45, %46 : vector<8x8xi1>, vector<8x8xf32>
      %c0_20 = arith.constant 0 : index
      %c0_21 = arith.constant 0 : index
      %48 = vector.load %arg9[%c0_20, %c0_21] : memref<8x1xf32, #tpu.memory_space<vmem>>, vector<8x1xf32>
      %49 = arith.mulf %42, %48 : vector<8x1xf32>
      %cst_22 = arith.constant dense<0.000000e+00> : vector<8xf32>
      %50 = vector.multi_reduction <add>, %47, %cst_22 [1] : vector<8x8xf32> to vector<8xf32>
      %51 = vector.shape_cast %50 : vector<8xf32> to vector<8x1xf32>
      %52 = arith.addf %49, %51 : vector<8x1xf32>
      %c0_23 = arith.constant 0 : index
      %c0_24 = arith.constant 0 : index
      %53 = vector.load %arg9[%c0_23, %c0_24] : memref<8x1xf32, #tpu.memory_space<vmem>>, vector<8x1xf32>
      tpu.vector_store %arg9[%c0_23, %c0_24], %52 {strides = array<i32>} : memref<8x1xf32, #tpu.memory_space<vmem>>, vector<8x1xf32>,
      %c0_25 = arith.constant 0 : index
      %c0_26 = arith.constant 0 : index
      %54 = vector.load %arg10[%c0_25, %c0_26] : memref<8x1xf32, #tpu.memory_space<vmem>>, vector<8x1xf32>
      %cst_27 = arith.constant 0.000000e+00 : f32
      %55 = vector.broadcast %cst_27 : f32 to vector<8x8xf32>
      %56 = arith.select %34, %5, %55 : vector<8x8xi1>, vector<8x8xf32>
      %cst_28 = arith.constant dense<0.000000e+00> : vector<8xf32>
      %57 = vector.multi_reduction <add>, %56, %cst_28 [1] : vector<8x8xf32> to vector<8xf32>
      %58 = vector.shape_cast %57 : vector<8xf32> to vector<8x1xf32>
      %59 = arith.addf %54, %58 : vector<8x1xf32>
      %c0_29 = arith.constant 0 : index
      %c0_30 = arith.constant 0 : index
      %60 = vector.load %arg10[%c0_29, %c0_30] : memref<8x1xf32, #tpu.memory_space<vmem>>, vector<8x1xf32>
      tpu.vector_store %arg10[%c0_29, %c0_30], %59 {strides = array<i32>} : memref<8x1xf32, #tpu.memory_space<vmem>>, vector<8x1xf32>,
      %c0_31 = arith.constant 0 : index
      %c0_32 = arith.constant 0 : index
      %61 = vector.load %arg8[%c0_31, %c0_32] : memref<8x1xf32, #tpu.memory_space<vmem>>, vector<8x1xf32>
      tpu.vector_store %arg8[%c0_31, %c0_32], %40 {strides = array<i32>} : memref<8x1xf32, #tpu.memory_space<vmem>>, vector<8x1xf32>,
    } else {
    }
    %c0_i32_11 = arith.constant 0 : i32
    %19 = arith.cmpi eq, %arg1, %c0_i32_11 : i32
    %20 = arith.extui %19 : i1 to i32
    %c0_i32_12 = arith.constant 0 : i32
    %21 = arith.cmpi ne, %20, %c0_i32_12 : i32
    scf.if %21 {
      %c0_13 = arith.constant 0 : index
      %c0_14 = arith.constant 0 : index
      %22 = vector.load %arg6[%c0_13, %c0_14] : memref<8x1xf32, #tpu.memory_space<vmem>>, vector<8x1xf32>
      %cst_15 = arith.constant 1.000000e+00 : f32
      %23 = vector.broadcast %cst_15 : f32 to vector<8x1xf32>
      %24 = arith.maximumf %22, %23 : vector<8x1xf32>
      %c0_16 = arith.constant 0 : index
      %c0_17 = arith.constant 0 : index
      %25 = vector.load %arg9[%c0_16, %c0_17] : memref<8x1xf32, #tpu.memory_space<vmem>>, vector<8x1xf32>
      %cst_18 = arith.constant 9.99999997E-7 : f32
      %26 = vector.broadcast %cst_18 : f32 to vector<8x1xf32>
      %27 = arith.addf %25, %26 : vector<8x1xf32>
      %28 = math.log %27 : vector<8x1xf32>
      %c0_19 = arith.constant 0 : index
      %c0_20 = arith.constant 0 : index
      %29 = vector.load %arg10[%c0_19, %c0_20] : memref<8x1xf32, #tpu.memory_space<vmem>>, vector<8x1xf32>
      %c0_21 = arith.constant 0 : index
      %c0_22 = arith.constant 0 : index
      %30 = vector.load %arg8[%c0_21, %c0_22] : memref<8x1xf32, #tpu.memory_space<vmem>>, vector<8x1xf32>
      %31 = arith.addf %30, %28 : vector<8x1xf32>
      %32 = arith.mulf %22, %31 : vector<8x1xf32>
      %33 = arith.subf %29, %32 : vector<8x1xf32>
      %34 = arith.divf %33, %24 : vector<8x1xf32>
      %cst_23 = arith.constant 0.000000e+00 : f32
      %35 = vector.broadcast %cst_23 : f32 to vector<8x1xf32>
      %36 = arith.subf %35, %34 : vector<8x1xf32>
      %c0_24 = arith.constant 0 : index
      %c0_25 = arith.constant 0 : index
      %37 = vector.load %arg7[%c0_24, %c0_25] : memref<8x1xf32, #tpu.memory_space<vmem>>, vector<8x1xf32>
      tpu.vector_store %arg7[%c0_24, %c0_25], %36 {strides = array<i32>} : memref<8x1xf32, #tpu.memory_space<vmem>>, vector<8x1xf32>,
    } else {
    }
    return
  }
  func.func @transform_0(%arg0: i32, %arg1: i32) -> (i32, i32) {
    %c0_i32 = arith.constant 0 : i32
    %c0_i32_0 = arith.constant 0 : i32
    return %arg0, %c0_i32 : i32, i32
  }
  func.func @transform_1(%arg0: i32, %arg1: i32) -> (i32, i32) {
    %c0_i32 = arith.constant 0 : i32
    %c0_i32_0 = arith.constant 0 : i32
    return %arg1, %c0_i32 : i32, i32
  }
  func.func @transform_2(%arg0: i32, %arg1: i32) -> (i32, i32) {
    %c0_i32 = arith.constant 0 : i32
    %c0_i32_0 = arith.constant 0 : i32
    return %arg0, %c0_i32 : i32, i32
  }
  func.func @transform_3(%arg0: i32, %arg1: i32) -> (i32, i32) {
    %c0_i32 = arith.constant 0 : i32
    %c0_i32_0 = arith.constant 0 : i32
    return %c0_i32, %arg1 : i32, i32
  }
  func.func @transform_4(%arg0: i32, %arg1: i32) -> (i32, i32) {
    %c0_i32 = arith.constant 0 : i32
    %c0_i32_0 = arith.constant 0 : i32
    return %arg0, %c0_i32 : i32, i32
  }
  func.func @transform_5(%arg0: i32, %arg1: i32) -> (i32, i32) {
    %c0_i32 = arith.constant 0 : i32
    %c0_i32_0 = arith.constant 0 : i32
    return %arg0, %c0_i32 : i32, i32
  }
}

</mosaic_0001>

<bundles_post_ra>
// kernel: tpu_custom_call.1
= control target key start
LH: loop header
LB: loop body
LE: loop exit
PB: predicated region body
PF: predicated region fallthrough
CT: control target
= control target key end

     0   :  { %vm24_vm0 = vcmask 7168   ;;  %v245_v0 = vmov 0.0   ;;  %vm246_vm1 = vmmov 0   ;;  %v116_v3 = vlaneseq  ;;  %s310_s1 = inlined_call_operand.vmem [shape: f32[8,128], index: 1, kind: input, shape index: {}]   ;;  %s311_s0 = inlined_call_operand.vmem [shape: f32[8,128], index: 0, kind: input, shape index: {}]   ;;  %s312_s2 = inlined_call_operand.vmem [shape: s32[8,1], index: 2, kind: input, shape index: {}]   ;;  %s313_s3 = inlined_call_operand.vmem [shape: s32[1,8], index: 3, kind: input, shape index: {}]   ;;  %s314_s4 = inlined_call_operand.vmem [shape: f32[8,1], index: 4, kind: input, shape index: {}]   ;;  %s315_s5 = inlined_call_operand.vmem [shape: f32[8,1], index: 5, kind: output, shape index: {}]  }
   0x1   :  { %26 = vst.msk [vmem:[#allocation3] sm:$0xff] %vm24_vm0, %v245_v0  ;;  %27 = vst.msk [vmem:[#allocation4] sm:$0xff] %vm24_vm0, %v245_v0  ;;  %226 = vmatprep.subr.mxu0 %v245_v0  ;;  %v29_v1 = vld [vmem:[%s310_s1] sm:$0xff]  ;;  %228 = vmatprep.mubr.msk.f32.mxu0 %vm246_vm1, %v245_v0  ;;  %v247_v5 = vmov 0   ;;  %v248_v8 = vmov -inf   ;;  %vm131_vm3 = vcmask 64512  }
   0x2   :  { %v100_v2 = vld [vmem:[%s312_s2] sm:$0xff]  ;;  %227 = vmatpush3.xpose.msra.mxu0 %v29_v1  ;;  %236 = vset.pattern.permute.xlu1 %v247_v5  ;;  %v117_v6 = vshrl.u32 %v116_v3, 7  ;;  %v122_v7 = vand.u32 127, %v116_v3  ;;  %25 = vst.msk [vmem:[#allocation2] sm:$0xff] %vm24_vm0, %v248_v8 }
   0x3   :  { %v28_v4 = vld [vmem:[%s311_s0] sm:$0xff]  ;;  %103 = vperm.xlu1 %236, %v100_v2   ;;  %235 = vset.pattern.permute.xlu0 %v247_v5 }
   0x4   :  { %vm126_vm2 = vcmp.ne.s32.totalorder %v117_v6, %v122_v7  ;;  %vm125_vm4 = vcmp.lt.s32.totalorder %v122_v7, 8  ;;  %v223_v20 = vld [vmem:[%s313_s3] ss:$0 sm:$0xff] }
   0x5   :  { %229 = vmatmul.mubr.f32.vlgmr.msra.gmra.mxu0 %v28_v4  ;;  %vm127_vm5 = vmand %vm125_vm4, %vm126_vm2  ;;  %v203_v38 = vld [vmem:[%s314_s4] sm:$0xff] }
   0x6   :  { %v204_v39 = vmax.f32 %v203_v38, 1.0 }
   0x8   :  { %v148_v29 = vld [vmem:[#allocation3] sm:$0xff]  ;;  %v156_v33 = vld [vmem:[#allocation4] sm:$0xff] }
   0x9   :  { %v129_v13 = vld [vmem:[#allocation2] sm:$0xff] }
  0x7e   :  { %v104_v21 = vpop.permute.xlu1 %103 }
  0x7f   :  { %vm109_vm6 = vcmp.eq.s32.totalorder %v104_v21, %v223_v20 }
  0x80   :  { %vm128_vm7 = vmand %vm127_vm5, %vm109_vm6 }
  0xc5   :  { %v96_v9 = vpop.f32.mrf.mxu0 }
  0xc6   :  { %v130_v10 = vsel %vm125_vm4, %v96_v9, -inf  ;;  %v157_v25 = vsel %vm128_vm7, %v96_v9, 0.0 }
  0xc7   :  { %v230_v11 = vpop.f32.mrf.mxu0  ;;  %v132_v12 = vsel %vm131_vm3, %v130_v10, -inf  ;;  %v158_v26 = vsel %vm131_vm3, %v157_v25, 0.0 }
  0xc8   :  { %133 = vmax.xlane.f32.xlu0 %v132_v12 }
 0x151   :  { %v134_v14 = vpop.xlane.xlu0 %133 }
 0x152   :  { %v135_v15 = vmax.f32 %v129_v13, %v134_v14 }
 0x154   :  { %v136_v16 = vsub.f32 %v129_v13, %v135_v15  ;;  %163 = vst.msk [vmem:[#allocation2] sm:$0xff] %vm24_vm0, %v135_v15  ;;  %141 = vperm.xlu0 %235, %v135_v15  }
 0x156   :  { %v137_v27 = vmul.f32 1.442695, %v136_v16 }
 0x15b   :  { %v210_v42 = vld [vmem:[#allocation2] sm:$0xff] }
 0x1cf   :  { %v142_v17 = vpop.permute.xlu0 %141 }
 0x1d0   :  { %v144_v18 = vsub.f32 %v96_v9, %v142_v17 }
 0x1d2   :  { %v145_v19 = vmul.f32 1.442695, %v144_v18 }
 0x1d4   :  { %237 = vpow2.f32 %v145_v19 }
 0x1d5   :  { %239 = vpow2.f32 %v137_v27 }
 0x1e1   :  { %v238_v22 = vpop.eup %237 }
 0x1e2   :  { %v147_v23 = vsel %vm127_vm5, %v238_v22, 0.0  ;;  %v240_v28 = vpop.eup %239 }
 0x1e3   :  { %v150_v24 = vsel %vm131_vm3, %v147_v23, 0.0  ;;  %v149_v30 = vmul.f32 %v240_v28, %v148_v29 }
 0x1e4   :  { %151 = vadd.xlane.f32.xlu1 %v150_v24 }
 0x1e8   :  { %159 = vadd.xlane.f32.xlu1 %v158_v26 }
 0x26d   :  { %v152_v31 = vpop.xlane.xlu1 %151 }
 0x26e   :  { %v153_v32 = vadd.f32 %v152_v31, %v149_v30 }
 0x270   :  { %155 = vst.msk [vmem:[#allocation3] sm:$0xff] %vm24_vm0, %v153_v32 }
 0x271   :  { %v160_v34 = vpop.xlane.xlu1 %159 }
 0x272   :  { %v161_v35 = vadd.f32 %v160_v34, %v156_v33 }
 0x274   :  { %162 = vst.msk [vmem:[#allocation4] sm:$0xff] %vm24_vm0, %v161_v35 }
 0x277   :  { %v205_v36 = vld [vmem:[#allocation3] sm:$0xff] }
 0x278   :  { %v206_v37 = vadd.f32 1e-06, %v205_v36 }
 0x27a   :  { %241 = vlog2.f32 %v206_v37 }
 0x27b   :  { %243 = vrcp.f32 %v204_v39  ;;  %v209_v46 = vld [vmem:[#allocation4] sm:$0xff] }
 0x287   :  { %v242_v40 = vpop.eup %241 }
 0x288   :  { %v208_v41 = vmul.f32 0.6931472, %v242_v40  ;;  %v244_v45 = vpop.eup %243 }
 0x28a   :  { %v211_v43 = vadd.f32 %v210_v42, %v208_v41 }
 0x28c   :  { %v212_v44 = vmul.f32 %v211_v43, %v203_v38 }
 0x28e   :  { %v213_v47 = vsub.f32 %v209_v46, %v212_v44 }
 0x290   :  { %v215_v48 = vmul.f32 %v244_v45, %v213_v47 }
 0x292   :  { %v216_v49 = vsub.f32 0.0, %v215_v48 }
 0x294   :  { %218 = vst.msk [vmem:[%s315_s5] sm:$0xff] %vm24_vm0, %v216_v49 }

</bundles_post_ra>
